<compile_context>
chip_gen: v5e
topology: v5e:2x2
jax: 0.10.0
libtpu: 0.0.40
codegen_flags: <defaults>
</compile_context>

<pallas_src>
import functools

import jax
import jax.numpy as jnp
from jax.experimental import pallas as pl
from jax.experimental.pallas import tpu as pltpu

INPUT_SIZE = 4
HIDDEN_SIZE = 15
OUTPUT_SIZE = 1


def mlp_kernel(x_ref, w1_ref, b1_ref, w2_ref, b2_ref, o_ref, *, tanh_dtype):
    """One batch tile; batch on (sublane, lane) axes.

    x_ref:  (INPUT_SIZE, TS, 128) f32  VMEM  (TS = TB // 128)
    w1_ref: (HIDDEN*INPUT,)       f32  SMEM, row-major W1[j, i]
    b1_ref: (HIDDEN,)             f32  SMEM
    w2_ref: (HIDDEN,)             f32  SMEM, W2[0, j]
    b2_ref: (1,)                  f32  SMEM
    o_ref:  (TS, 128)             f32  VMEM
    """
    # Input feature slabs, each (TS, 128) -- fully dense vregs.
    xi = [x_ref[i] for i in range(INPUT_SIZE)]

    # Binary-counter accumulation of the 15 layer-2 terms: at most
    # ceil(log2(15)) = 4 partial slabs are live at any time (low vreg
    # pressure) and the add chain is a tree rather than 15-deep serial.
    partials = []  # partials[k] is a sum of 2**k terms, or None
    for j in range(HIDDEN_SIZE):
        # Layer 1, hidden unit j: 4-term scalar-broadcast FMA chain (VPU).
        pre = b1_ref[j]
        for i in range(INPUT_SIZE):
            pre = pre + w1_ref[j * INPUT_SIZE + i] * xi[i]
        # tanh on the EUP (bf16 on v6e/v7x to double EUP throughput).
        h = jnp.tanh(pre.astype(tanh_dtype)).astype(jnp.float32)
        # Layer 2 term, folded into the binary counter.
        t = w2_ref[j] * h
        k = 0
        while k < len(partials) and partials[k] is not None:
            t = partials[k] + t
            partials[k] = None
            k += 1
        if k == len(partials):
            partials.append(t)
        else:
            partials[k] = t

    out = None
    for p in partials:
        if p is not None:
            out = p if out is None else out + p

    # Sublane- and lane-dense, unmasked store.
    o_ref[...] = out + b2_ref[0]


def _default_tanh_dtype():
    # bf16 tanh keeps the single EUP off the critical path on v6e/v7x;
    # older chips (v5e and earlier) have no bf16 EUP/VPU, so stay in f32.
    try:
        kind = jax.devices()[0].device_kind.lower()
    except Exception:
        return jnp.float32
    if "v6" in kind or "v7" in kind:
        return jnp.bfloat16
    return jnp.float32


def _choose_tiles(batch, block_batch, min_tiles=8):
    """Pick (tb, n_tiles): tb = lanes per grid step (multiple of 128)."""
    b128 = 128 * pl.cdiv(batch, 128)           # batch rounded up to lanes
    if b128 <= 1024:
        # Tiny batch: a single tile equal to the full (padded) array.
        return b128, 1
    # Sublane-dense tiles: TB a multiple of 1024 so TS = TB//128 is a
    # multiple of 8 (the (8, 128) BlockSpec constraint).
    block_batch = 1024 * pl.cdiv(max(block_batch, 1024), 1024)
    # Aim for >= min_tiles grid steps (megacore sharding + pipelining),
    # but never exceed block_batch lanes (~1 MiB input / 256 KiB output
    # per step at the 64K default -> double-buffered VMEM ~2.5 MiB).
    tb = min(block_batch, 1024 * pl.cdiv(pl.cdiv(b128, min_tiles), 1024))
    tb = max(tb, 1024)
    n_tiles = pl.cdiv(b128, tb)
    return tb, n_tiles


def net_forward_lanes(x_t, w1, b1, w2, b2, *, tb, n_tiles,
                      tanh_dtype=None):
    """Kernel entry for inputs already in lane layout.

    x_t: (INPUT_SIZE, S, 128) float32 with S = n_tiles * (tb // 128);
         x_t[i, r, c] = x[r*128 + c, i].
    Returns (S, 128) float32 (batch index = r*128 + c).
    """
    if tanh_dtype is None:
        tanh_dtype = _default_tanh_dtype()
    s_total = x_t.shape[1]
    ts = tb // 128
    assert s_total == n_tiles * ts

    w1_flat = w1.reshape(-1).astype(jnp.float32)   # (60,) W1[j, i]
    b1_flat = b1.reshape(-1).astype(jnp.float32)   # (15,)
    w2_flat = w2.reshape(-1).astype(jnp.float32)   # (15,)
    b2_flat = b2.reshape(-1).astype(jnp.float32)   # (1,)

    kernel = functools.partial(mlp_kernel, tanh_dtype=tanh_dtype)
    smem_spec = pl.BlockSpec(memory_space=pltpu.MemorySpace.SMEM)

    return pl.pallas_call(
        kernel,
        out_shape=jax.ShapeDtypeStruct((s_total, 128), jnp.float32),
        grid=(n_tiles,),
        in_specs=[
            pl.BlockSpec((INPUT_SIZE, ts, 128), lambda i: (0, i, 0)),  # x tile
            smem_spec,  # w1
            smem_spec,  # b1
            smem_spec,  # w2
            smem_spec,  # b2
        ],
        out_specs=pl.BlockSpec((ts, 128), lambda i: (i, 0)),
        compiler_params=pltpu.CompilerParams(
            dimension_semantics=("parallel",)),
    )(x_t, w1_flat, b1_flat, w2_flat, b2_flat)


def net_forward(x, w1, b1, w2, b2, *, block_batch=64 * 1024,
                tanh_dtype=None):
    """Two-layer MLP forward matching PyTorch Net.forward.

    x:  (B, 4) float32
    w1: (15, 4), b1: (15,)   -- PyTorch nn.Linear (out_features, in_features)
    w2: (1, 15), b2: (1,)
    returns (B, 1) float32
    """
    B = x.shape[0]
    tb, n_tiles = _choose_tiles(B, block_batch)
    b_pad = n_tiles * tb

    # Layout pass: (B, 4) -> (4, B_pad//128, 128). Producers that can emit x
    # directly in this layout should call net_forward_lanes and skip this
    # extra HBM read/write entirely.
    x_pad = jnp.pad(x, ((0, b_pad - B), (0, 0)))
    x_t = x_pad.T.reshape(INPUT_SIZE, b_pad // 128, 128)

    out = net_forward_lanes(x_t, w1, b1, w2, b2, tb=tb, n_tiles=n_tiles,
                            tanh_dtype=tanh_dtype)          # (b_pad//128, 128)
    return out.reshape(b_pad)[:B].reshape(B, OUTPUT_SIZE)


def init_params(key):
    """Deterministic init mimicking nn.Linear (uniform +-1/sqrt(fan_in)).

    Weights are kept in PyTorch convention: (out_features, in_features).
    """
    k1, k2, k3, k4 = jax.random.split(key, 4)
    bound1 = 1.0 / jnp.sqrt(INPUT_SIZE)
    bound2 = 1.0 / jnp.sqrt(HIDDEN_SIZE)
    w1 = jax.random.uniform(k1, (HIDDEN_SIZE, INPUT_SIZE), jnp.float32,
                            -bound1, bound1)
    b1 = jax.random.uniform(k2, (HIDDEN_SIZE,), jnp.float32, -bound1, bound1)
    w2 = jax.random.uniform(k3, (OUTPUT_SIZE, HIDDEN_SIZE), jnp.float32,
                            -bound2, bound2)
    b2 = jax.random.uniform(k4, (OUTPUT_SIZE,), jnp.float32, -bound2, bound2)
    return w1, b1, w2, b2


if __name__ == "__main__":
    key = jax.random.PRNGKey(0)
    kx, kp = jax.random.split(key)
    w1, b1, w2, b2 = init_params(kp)

    def ref_forward(x):
        h = jnp.tanh(
            jnp.dot(x, w1.T, precision=jax.lax.Precision.HIGHEST) + b1)
        return jnp.dot(h, w2.T, precision=jax.lax.Precision.HIGHEST) + b2

    # 1) Small batch, exact f32 tanh path (single full-dim tile).
    x_small = jax.random.normal(kx, (8, INPUT_SIZE), jnp.float32)
    out_small = jax.block_until_ready(
        net_forward(x_small, w1, b1, w2, b2, tanh_dtype=jnp.float32))
    assert out_small.shape == (8, OUTPUT_SIZE)
    assert jnp.allclose(out_small, ref_forward(x_small), atol=1e-5, rtol=1e-5)

    # 2) Small batch, bf16-tanh path (recommended default on v6e/v7x),
    #    validated at a looser tolerance.
    out_small_bf16 = jax.block_until_ready(
        net_forward(x_small, w1, b1, w2, b2, tanh_dtype=jnp.bfloat16))
    assert out_small_bf16.shape == (8, OUTPUT_SIZE)
    assert jnp.allclose(out_small_bf16, ref_forward(x_small), atol=5e-2)

    # 3) Multi-tile batch with ragged tail: exercises sublane-dense
    #    (TS=8, 128) blocks, batch tiling, and the chip-default tanh dtype.
    x_big = jax.random.normal(kx, (2500, INPUT_SIZE), jnp.float32)
    out_big = jax.block_until_ready(
        net_forward(x_big, w1, b1, w2, b2, block_batch=1024))
    assert out_big.shape == (2500, OUTPUT_SIZE)
    assert jnp.allclose(out_big, ref_forward(x_big), atol=5e-2)

    print("KERNEL_OK")
</pallas_src>

<mosaic_0001>
module attributes {stable_mosaic.version = 11 : i64} {
  func.func @mlp_kernel(%arg0: i32, %arg1: memref<4x1x128xf32, #tpu.memory_space<vmem>>, %arg2: memref<60xf32, #tpu.memory_space<smem>>, %arg3: memref<15xf32, #tpu.memory_space<smem>>, %arg4: memref<15xf32, #tpu.memory_space<smem>>, %arg5: memref<1xf32, #tpu.memory_space<smem>>, %arg6: memref<1x128xf32, #tpu.memory_space<vmem>>) attributes {dimension_semantics = [#tpu.dimension_semantics<parallel>], iteration_bounds = array<i64: 1>, scalar_prefetch = 0 : i64, scratch_operands = 0 : i64, tpu.core_type = #tpu.core_type<tc>, window_params = [{transform_indices = @transform_0, window_bounds = array<i64: 4, 1, 128>}, {transform_indices = @transform_1, window_bounds = array<i64: 60>}, {transform_indices = @transform_2, window_bounds = array<i64: 15>}, {transform_indices = @transform_3, window_bounds = array<i64: 15>}, {transform_indices = @transform_4, window_bounds = array<i64: 1>}, {transform_indices = @transform_5, window_bounds = array<i64: 1, 128>}]} {
    %c0 = arith.constant 0 : index
    %c0_0 = arith.constant 0 : index
    %c0_1 = arith.constant 0 : index
    %0 = vector.load %arg1[%c0, %c0_0, %c0_1] : memref<4x1x128xf32, #tpu.memory_space<vmem>>, vector<1x1x128xf32>
    %1 = vector.shape_cast %0 : vector<1x1x128xf32> to vector<1x128xf32>
    %c1 = arith.constant 1 : index
    %c0_2 = arith.constant 0 : index
    %c0_3 = arith.constant 0 : index
    %2 = vector.load %arg1[%c1, %c0_2, %c0_3] : memref<4x1x128xf32, #tpu.memory_space<vmem>>, vector<1x1x128xf32>
    %3 = vector.shape_cast %2 : vector<1x1x128xf32> to vector<1x128xf32>
    %c2 = arith.constant 2 : index
    %c0_4 = arith.constant 0 : index
    %c0_5 = arith.constant 0 : index
    %4 = vector.load %arg1[%c2, %c0_4, %c0_5] : memref<4x1x128xf32, #tpu.memory_space<vmem>>, vector<1x1x128xf32>
    %5 = vector.shape_cast %4 : vector<1x1x128xf32> to vector<1x128xf32>
    %c3 = arith.constant 3 : index
    %c0_6 = arith.constant 0 : index
    %c0_7 = arith.constant 0 : index
    %6 = vector.load %arg1[%c3, %c0_6, %c0_7] : memref<4x1x128xf32, #tpu.memory_space<vmem>>, vector<1x1x128xf32>
    %7 = vector.shape_cast %6 : vector<1x1x128xf32> to vector<1x128xf32>
    %c0_8 = arith.constant 0 : index
    %8 = memref.load %arg3[%c0_8] : memref<15xf32, #tpu.memory_space<smem>>
    %c0_9 = arith.constant 0 : index
    %9 = memref.load %arg2[%c0_9] : memref<60xf32, #tpu.memory_space<smem>>
    %10 = vector.broadcast %9 : f32 to vector<1x128xf32>
    %11 = arith.mulf %10, %1 : vector<1x128xf32>
    %12 = vector.broadcast %8 : f32 to vector<1x128xf32>
    %13 = arith.addf %12, %11 : vector<1x128xf32>
    %c1_10 = arith.constant 1 : index
    %14 = memref.load %arg2[%c1_10] : memref<60xf32, #tpu.memory_space<smem>>
    %15 = vector.broadcast %14 : f32 to vector<1x128xf32>
    %16 = arith.mulf %15, %3 : vector<1x128xf32>
    %17 = arith.addf %13, %16 : vector<1x128xf32>
    %c2_11 = arith.constant 2 : index
    %18 = memref.load %arg2[%c2_11] : memref<60xf32, #tpu.memory_space<smem>>
    %19 = vector.broadcast %18 : f32 to vector<1x128xf32>
    %20 = arith.mulf %19, %5 : vector<1x128xf32>
    %21 = arith.addf %17, %20 : vector<1x128xf32>
    %c3_12 = arith.constant 3 : index
    %22 = memref.load %arg2[%c3_12] : memref<60xf32, #tpu.memory_space<smem>>
    %23 = vector.broadcast %22 : f32 to vector<1x128xf32>
    %24 = arith.mulf %23, %7 : vector<1x128xf32>
    %25 = arith.addf %21, %24 : vector<1x128xf32>
    %26 = math.tanh %25 : vector<1x128xf32>
    %c0_13 = arith.constant 0 : index
    %27 = memref.load %arg4[%c0_13] : memref<15xf32, #tpu.memory_space<smem>>
    %28 = vector.broadcast %27 : f32 to vector<1x128xf32>
    %29 = arith.mulf %28, %26 : vector<1x128xf32>
    %c1_14 = arith.constant 1 : index
    %30 = memref.load %arg3[%c1_14] : memref<15xf32, #tpu.memory_space<smem>>
    %c4 = arith.constant 4 : index
    %31 = memref.load %arg2[%c4] : memref<60xf32, #tpu.memory_space<smem>>
    %32 = vector.broadcast %31 : f32 to vector<1x128xf32>
    %33 = arith.mulf %32, %1 : vector<1x128xf32>
    %34 = vector.broadcast %30 : f32 to vector<1x128xf32>
    %35 = arith.addf %34, %33 : vector<1x128xf32>
    %c5 = arith.constant 5 : index
    %36 = memref.load %arg2[%c5] : memref<60xf32, #tpu.memory_space<smem>>
    %37 = vector.broadcast %36 : f32 to vector<1x128xf32>
    %38 = arith.mulf %37, %3 : vector<1x128xf32>
    %39 = arith.addf %35, %38 : vector<1x128xf32>
    %c6 = arith.constant 6 : index
    %40 = memref.load %arg2[%c6] : memref<60xf32, #tpu.memory_space<smem>>
    %41 = vector.broadcast %40 : f32 to vector<1x128xf32>
    %42 = arith.mulf %41, %5 : vector<1x128xf32>
    %43 = arith.addf %39, %42 : vector<1x128xf32>
    %c7 = arith.constant 7 : index
    %44 = memref.load %arg2[%c7] : memref<60xf32, #tpu.memory_space<smem>>
    %45 = vector.broadcast %44 : f32 to vector<1x128xf32>
    %46 = arith.mulf %45, %7 : vector<1x128xf32>
    %47 = arith.addf %43, %46 : vector<1x128xf32>
    %48 = math.tanh %47 : vector<1x128xf32>
    %c1_15 = arith.constant 1 : index
    %49 = memref.load %arg4[%c1_15] : memref<15xf32, #tpu.memory_space<smem>>
    %50 = vector.broadcast %49 : f32 to vector<1x128xf32>
    %51 = arith.mulf %50, %48 : vector<1x128xf32>
    %52 = arith.addf %29, %51 : vector<1x128xf32>
    %c2_16 = arith.constant 2 : index
    %53 = memref.load %arg3[%c2_16] : memref<15xf32, #tpu.memory_space<smem>>
    %c8 = arith.constant 8 : index
    %54 = memref.load %arg2[%c8] : memref<60xf32, #tpu.memory_space<smem>>
    %55 = vector.broadcast %54 : f32 to vector<1x128xf32>
    %56 = arith.mulf %55, %1 : vector<1x128xf32>
    %57 = vector.broadcast %53 : f32 to vector<1x128xf32>
    %58 = arith.addf %57, %56 : vector<1x128xf32>
    %c9 = arith.constant 9 : index
    %59 = memref.load %arg2[%c9] : memref<60xf32, #tpu.memory_space<smem>>
    %60 = vector.broadcast %59 : f32 to vector<1x128xf32>
    %61 = arith.mulf %60, %3 : vector<1x128xf32>
    %62 = arith.addf %58, %61 : vector<1x128xf32>
    %c10 = arith.constant 10 : index
    %63 = memref.load %arg2[%c10] : memref<60xf32, #tpu.memory_space<smem>>
    %64 = vector.broadcast %63 : f32 to vector<1x128xf32>
    %65 = arith.mulf %64, %5 : vector<1x128xf32>
    %66 = arith.addf %62, %65 : vector<1x128xf32>
    %c11 = arith.constant 11 : index
    %67 = memref.load %arg2[%c11] : memref<60xf32, #tpu.memory_space<smem>>
    %68 = vector.broadcast %67 : f32 to vector<1x128xf32>
    %69 = arith.mulf %68, %7 : vector<1x128xf32>
    %70 = arith.addf %66, %69 : vector<1x128xf32>
    %71 = math.tanh %70 : vector<1x128xf32>
    %c2_17 = arith.constant 2 : index
    %72 = memref.load %arg4[%c2_17] : memref<15xf32, #tpu.memory_space<smem>>
    %73 = vector.broadcast %72 : f32 to vector<1x128xf32>
    %74 = arith.mulf %73, %71 : vector<1x128xf32>
    %c3_18 = arith.constant 3 : index
    %75 = memref.load %arg3[%c3_18] : memref<15xf32, #tpu.memory_space<smem>>
    %c12 = arith.constant 12 : index
    %76 = memref.load %arg2[%c12] : memref<60xf32, #tpu.memory_space<smem>>
    %77 = vector.broadcast %76 : f32 to vector<1x128xf32>
    %78 = arith.mulf %77, %1 : vector<1x128xf32>
    %79 = vector.broadcast %75 : f32 to vector<1x128xf32>
    %80 = arith.addf %79, %78 : vector<1x128xf32>
    %c13 = arith.constant 13 : index
    %81 = memref.load %arg2[%c13] : memref<60xf32, #tpu.memory_space<smem>>
    %82 = vector.broadcast %81 : f32 to vector<1x128xf32>
    %83 = arith.mulf %82, %3 : vector<1x128xf32>
    %84 = arith.addf %80, %83 : vector<1x128xf32>
    %c14 = arith.constant 14 : index
    %85 = memref.load %arg2[%c14] : memref<60xf32, #tpu.memory_space<smem>>
    %86 = vector.broadcast %85 : f32 to vector<1x128xf32>
    %87 = arith.mulf %86, %5 : vector<1x128xf32>
    %88 = arith.addf %84, %87 : vector<1x128xf32>
    %c15 = arith.constant 15 : index
    %89 = memref.load %arg2[%c15] : memref<60xf32, #tpu.memory_space<smem>>
    %90 = vector.broadcast %89 : f32 to vector<1x128xf32>
    %91 = arith.mulf %90, %7 : vector<1x128xf32>
    %92 = arith.addf %88, %91 : vector<1x128xf32>
    %93 = math.tanh %92 : vector<1x128xf32>
    %c3_19 = arith.constant 3 : index
    %94 = memref.load %arg4[%c3_19] : memref<15xf32, #tpu.memory_space<smem>>
    %95 = vector.broadcast %94 : f32 to vector<1x128xf32>
    %96 = arith.mulf %95, %93 : vector<1x128xf32>
    %97 = arith.addf %74, %96 : vector<1x128xf32>
    %98 = arith.addf %52, %97 : vector<1x128xf32>
    %c4_20 = arith.constant 4 : index
    %99 = memref.load %arg3[%c4_20] : memref<15xf32, #tpu.memory_space<smem>>
    %c16 = arith.constant 16 : index
    %100 = memref.load %arg2[%c16] : memref<60xf32, #tpu.memory_space<smem>>
    %101 = vector.broadcast %100 : f32 to vector<1x128xf32>
    %102 = arith.mulf %101, %1 : vector<1x128xf32>
    %103 = vector.broadcast %99 : f32 to vector<1x128xf32>
    %104 = arith.addf %103, %102 : vector<1x128xf32>
    %c17 = arith.constant 17 : index
    %105 = memref.load %arg2[%c17] : memref<60xf32, #tpu.memory_space<smem>>
    %106 = vector.broadcast %105 : f32 to vector<1x128xf32>
    %107 = arith.mulf %106, %3 : vector<1x128xf32>
    %108 = arith.addf %104, %107 : vector<1x128xf32>
    %c18 = arith.constant 18 : index
    %109 = memref.load %arg2[%c18] : memref<60xf32, #tpu.memory_space<smem>>
    %110 = vector.broadcast %109 : f32 to vector<1x128xf32>
    %111 = arith.mulf %110, %5 : vector<1x128xf32>
    %112 = arith.addf %108, %111 : vector<1x128xf32>
    %c19 = arith.constant 19 : index
    %113 = memref.load %arg2[%c19] : memref<60xf32, #tpu.memory_space<smem>>
    %114 = vector.broadcast %113 : f32 to vector<1x128xf32>
    %115 = arith.mulf %114, %7 : vector<1x128xf32>
    %116 = arith.addf %112, %115 : vector<1x128xf32>
    %117 = math.tanh %116 : vector<1x128xf32>
    %c4_21 = arith.constant 4 : index
    %118 = memref.load %arg4[%c4_21] : memref<15xf32, #tpu.memory_space<smem>>
    %119 = vector.broadcast %118 : f32 to vector<1x128xf32>
    %120 = arith.mulf %119, %117 : vector<1x128xf32>
    %c5_22 = arith.constant 5 : index
    %121 = memref.load %arg3[%c5_22] : memref<15xf32, #tpu.memory_space<smem>>
    %c20 = arith.constant 20 : index
    %122 = memref.load %arg2[%c20] : memref<60xf32, #tpu.memory_space<smem>>
    %123 = vector.broadcast %122 : f32 to vector<1x128xf32>
    %124 = arith.mulf %123, %1 : vector<1x128xf32>
    %125 = vector.broadcast %121 : f32 to vector<1x128xf32>
    %126 = arith.addf %125, %124 : vector<1x128xf32>
    %c21 = arith.constant 21 : index
    %127 = memref.load %arg2[%c21] : memref<60xf32, #tpu.memory_space<smem>>
    %128 = vector.broadcast %127 : f32 to vector<1x128xf32>
    %129 = arith.mulf %128, %3 : vector<1x128xf32>
    %130 = arith.addf %126, %129 : vector<1x128xf32>
    %c22 = arith.constant 22 : index
    %131 = memref.load %arg2[%c22] : memref<60xf32, #tpu.memory_space<smem>>
    %132 = vector.broadcast %131 : f32 to vector<1x128xf32>
    %133 = arith.mulf %132, %5 : vector<1x128xf32>
    %134 = arith.addf %130, %133 : vector<1x128xf32>
    %c23 = arith.constant 23 : index
    %135 = memref.load %arg2[%c23] : memref<60xf32, #tpu.memory_space<smem>>
    %136 = vector.broadcast %135 : f32 to vector<1x128xf32>
    %137 = arith.mulf %136, %7 : vector<1x128xf32>
    %138 = arith.addf %134, %137 : vector<1x128xf32>
    %139 = math.tanh %138 : vector<1x128xf32>
    %c5_23 = arith.constant 5 : index
    %140 = memref.load %arg4[%c5_23] : memref<15xf32, #tpu.memory_space<smem>>
    %141 = vector.broadcast %140 : f32 to vector<1x128xf32>
    %142 = arith.mulf %141, %139 : vector<1x128xf32>
    %143 = arith.addf %120, %142 : vector<1x128xf32>
    %c6_24 = arith.constant 6 : index
    %144 = memref.load %arg3[%c6_24] : memref<15xf32, #tpu.memory_space<smem>>
    %c24 = arith.constant 24 : index
    %145 = memref.load %arg2[%c24] : memref<60xf32, #tpu.memory_space<smem>>
    %146 = vector.broadcast %145 : f32 to vector<1x128xf32>
    %147 = arith.mulf %146, %1 : vector<1x128xf32>
    %148 = vector.broadcast %144 : f32 to vector<1x128xf32>
    %149 = arith.addf %148, %147 : vector<1x128xf32>
    %c25 = arith.constant 25 : index
    %150 = memref.load %arg2[%c25] : memref<60xf32, #tpu.memory_space<smem>>
    %151 = vector.broadcast %150 : f32 to vector<1x128xf32>
    %152 = arith.mulf %151, %3 : vector<1x128xf32>
    %153 = arith.addf %149, %152 : vector<1x128xf32>
    %c26 = arith.constant 26 : index
    %154 = memref.load %arg2[%c26] : memref<60xf32, #tpu.memory_space<smem>>
    %155 = vector.broadcast %154 : f32 to vector<1x128xf32>
    %156 = arith.mulf %155, %5 : vector<1x128xf32>
    %157 = arith.addf %153, %156 : vector<1x128xf32>
    %c27 = arith.constant 27 : index
    %158 = memref.load %arg2[%c27] : memref<60xf32, #tpu.memory_space<smem>>
    %159 = vector.broadcast %158 : f32 to vector<1x128xf32>
    %160 = arith.mulf %159, %7 : vector<1x128xf32>
    %161 = arith.addf %157, %160 : vector<1x128xf32>
    %162 = math.tanh %161 : vector<1x128xf32>
    %c6_25 = arith.constant 6 : index
    %163 = memref.load %arg4[%c6_25] : memref<15xf32, #tpu.memory_space<smem>>
    %164 = vector.broadcast %163 : f32 to vector<1x128xf32>
    %165 = arith.mulf %164, %162 : vector<1x128xf32>
    %c7_26 = arith.constant 7 : index
    %166 = memref.load %arg3[%c7_26] : memref<15xf32, #tpu.memory_space<smem>>
    %c28 = arith.constant 28 : index
    %167 = memref.load %arg2[%c28] : memref<60xf32, #tpu.memory_space<smem>>
    %168 = vector.broadcast %167 : f32 to vector<1x128xf32>
    %169 = arith.mulf %168, %1 : vector<1x128xf32>
    %170 = vector.broadcast %166 : f32 to vector<1x128xf32>
    %171 = arith.addf %170, %169 : vector<1x128xf32>
    %c29 = arith.constant 29 : index
    %172 = memref.load %arg2[%c29] : memref<60xf32, #tpu.memory_space<smem>>
    %173 = vector.broadcast %172 : f32 to vector<1x128xf32>
    %174 = arith.mulf %173, %3 : vector<1x128xf32>
    %175 = arith.addf %171, %174 : vector<1x128xf32>
    %c30 = arith.constant 30 : index
    %176 = memref.load %arg2[%c30] : memref<60xf32, #tpu.memory_space<smem>>
    %177 = vector.broadcast %176 : f32 to vector<1x128xf32>
    %178 = arith.mulf %177, %5 : vector<1x128xf32>
    %179 = arith.addf %175, %178 : vector<1x128xf32>
    %c31 = arith.constant 31 : index
    %180 = memref.load %arg2[%c31] : memref<60xf32, #tpu.memory_space<smem>>
    %181 = vector.broadcast %180 : f32 to vector<1x128xf32>
    %182 = arith.mulf %181, %7 : vector<1x128xf32>
    %183 = arith.addf %179, %182 : vector<1x128xf32>
    %184 = math.tanh %183 : vector<1x128xf32>
    %c7_27 = arith.constant 7 : index
    %185 = memref.load %arg4[%c7_27] : memref<15xf32, #tpu.memory_space<smem>>
    %186 = vector.broadcast %185 : f32 to vector<1x128xf32>
    %187 = arith.mulf %186, %184 : vector<1x128xf32>
    %188 = arith.addf %165, %187 : vector<1x128xf32>
    %189 = arith.addf %143, %188 : vector<1x128xf32>
    %190 = arith.addf %98, %189 : vector<1x128xf32>
    %c8_28 = arith.constant 8 : index
    %191 = memref.load %arg3[%c8_28] : memref<15xf32, #tpu.memory_space<smem>>
    %c32 = arith.constant 32 : index
    %192 = memref.load %arg2[%c32] : memref<60xf32, #tpu.memory_space<smem>>
    %193 = vector.broadcast %192 : f32 to vector<1x128xf32>
    %194 = arith.mulf %193, %1 : vector<1x128xf32>
    %195 = vector.broadcast %191 : f32 to vector<1x128xf32>
    %196 = arith.addf %195, %194 : vector<1x128xf32>
    %c33 = arith.constant 33 : index
    %197 = memref.load %arg2[%c33] : memref<60xf32, #tpu.memory_space<smem>>
    %198 = vector.broadcast %197 : f32 to vector<1x128xf32>
    %199 = arith.mulf %198, %3 : vector<1x128xf32>
    %200 = arith.addf %196, %199 : vector<1x128xf32>
    %c34 = arith.constant 34 : index
    %201 = memref.load %arg2[%c34] : memref<60xf32, #tpu.memory_space<smem>>
    %202 = vector.broadcast %201 : f32 to vector<1x128xf32>
    %203 = arith.mulf %202, %5 : vector<1x128xf32>
    %204 = arith.addf %200, %203 : vector<1x128xf32>
    %c35 = arith.constant 35 : index
    %205 = memref.load %arg2[%c35] : memref<60xf32, #tpu.memory_space<smem>>
    %206 = vector.broadcast %205 : f32 to vector<1x128xf32>
    %207 = arith.mulf %206, %7 : vector<1x128xf32>
    %208 = arith.addf %204, %207 : vector<1x128xf32>
    %209 = math.tanh %208 : vector<1x128xf32>
    %c8_29 = arith.constant 8 : index
    %210 = memref.load %arg4[%c8_29] : memref<15xf32, #tpu.memory_space<smem>>
    %211 = vector.broadcast %210 : f32 to vector<1x128xf32>
    %212 = arith.mulf %211, %209 : vector<1x128xf32>
    %c9_30 = arith.constant 9 : index
    %213 = memref.load %arg3[%c9_30] : memref<15xf32, #tpu.memory_space<smem>>
    %c36 = arith.constant 36 : index
    %214 = memref.load %arg2[%c36] : memref<60xf32, #tpu.memory_space<smem>>
    %215 = vector.broadcast %214 : f32 to vector<1x128xf32>
    %216 = arith.mulf %215, %1 : vector<1x128xf32>
    %217 = vector.broadcast %213 : f32 to vector<1x128xf32>
    %218 = arith.addf %217, %216 : vector<1x128xf32>
    %c37 = arith.constant 37 : index
    %219 = memref.load %arg2[%c37] : memref<60xf32, #tpu.memory_space<smem>>
    %220 = vector.broadcast %219 : f32 to vector<1x128xf32>
    %221 = arith.mulf %220, %3 : vector<1x128xf32>
    %222 = arith.addf %218, %221 : vector<1x128xf32>
    %c38 = arith.constant 38 : index
    %223 = memref.load %arg2[%c38] : memref<60xf32, #tpu.memory_space<smem>>
    %224 = vector.broadcast %223 : f32 to vector<1x128xf32>
    %225 = arith.mulf %224, %5 : vector<1x128xf32>
    %226 = arith.addf %222, %225 : vector<1x128xf32>
    %c39 = arith.constant 39 : index
    %227 = memref.load %arg2[%c39] : memref<60xf32, #tpu.memory_space<smem>>
    %228 = vector.broadcast %227 : f32 to vector<1x128xf32>
    %229 = arith.mulf %228, %7 : vector<1x128xf32>
    %230 = arith.addf %226, %229 : vector<1x128xf32>
    %231 = math.tanh %230 : vector<1x128xf32>
    %c9_31 = arith.constant 9 : index
    %232 = memref.load %arg4[%c9_31] : memref<15xf32, #tpu.memory_space<smem>>
    %233 = vector.broadcast %232 : f32 to vector<1x128xf32>
    %234 = arith.mulf %233, %231 : vector<1x128xf32>
    %235 = arith.addf %212, %234 : vector<1x128xf32>
    %c10_32 = arith.constant 10 : index
    %236 = memref.load %arg3[%c10_32] : memref<15xf32, #tpu.memory_space<smem>>
    %c40 = arith.constant 40 : index
    %237 = memref.load %arg2[%c40] : memref<60xf32, #tpu.memory_space<smem>>
    %238 = vector.broadcast %237 : f32 to vector<1x128xf32>
    %239 = arith.mulf %238, %1 : vector<1x128xf32>
    %240 = vector.broadcast %236 : f32 to vector<1x128xf32>
    %241 = arith.addf %240, %239 : vector<1x128xf32>
    %c41 = arith.constant 41 : index
    %242 = memref.load %arg2[%c41] : memref<60xf32, #tpu.memory_space<smem>>
    %243 = vector.broadcast %242 : f32 to vector<1x128xf32>
    %244 = arith.mulf %243, %3 : vector<1x128xf32>
    %245 = arith.addf %241, %244 : vector<1x128xf32>
    %c42 = arith.constant 42 : index
    %246 = memref.load %arg2[%c42] : memref<60xf32, #tpu.memory_space<smem>>
    %247 = vector.broadcast %246 : f32 to vector<1x128xf32>
    %248 = arith.mulf %247, %5 : vector<1x128xf32>
    %249 = arith.addf %245, %248 : vector<1x128xf32>
    %c43 = arith.constant 43 : index
    %250 = memref.load %arg2[%c43] : memref<60xf32, #tpu.memory_space<smem>>
    %251 = vector.broadcast %250 : f32 to vector<1x128xf32>
    %252 = arith.mulf %251, %7 : vector<1x128xf32>
    %253 = arith.addf %249, %252 : vector<1x128xf32>
    %254 = math.tanh %253 : vector<1x128xf32>
    %c10_33 = arith.constant 10 : index
    %255 = memref.load %arg4[%c10_33] : memref<15xf32, #tpu.memory_space<smem>>
    %256 = vector.broadcast %255 : f32 to vector<1x128xf32>
    %257 = arith.mulf %256, %254 : vector<1x128xf32>
    %c11_34 = arith.constant 11 : index
    %258 = memref.load %arg3[%c11_34] : memref<15xf32, #tpu.memory_space<smem>>
    %c44 = arith.constant 44 : index
    %259 = memref.load %arg2[%c44] : memref<60xf32, #tpu.memory_space<smem>>
    %260 = vector.broadcast %259 : f32 to vector<1x128xf32>
    %261 = arith.mulf %260, %1 : vector<1x128xf32>
    %262 = vector.broadcast %258 : f32 to vector<1x128xf32>
    %263 = arith.addf %262, %261 : vector<1x128xf32>
    %c45 = arith.constant 45 : index
    %264 = memref.load %arg2[%c45] : memref<60xf32, #tpu.memory_space<smem>>
    %265 = vector.broadcast %264 : f32 to vector<1x128xf32>
    %266 = arith.mulf %265, %3 : vector<1x128xf32>
    %267 = arith.addf %263, %266 : vector<1x128xf32>
    %c46 = arith.constant 46 : index
    %268 = memref.load %arg2[%c46] : memref<60xf32, #tpu.memory_space<smem>>
    %269 = vector.broadcast %268 : f32 to vector<1x128xf32>
    %270 = arith.mulf %269, %5 : vector<1x128xf32>
    %271 = arith.addf %267, %270 : vector<1x128xf32>
    %c47 = arith.constant 47 : index
    %272 = memref.load %arg2[%c47] : memref<60xf32, #tpu.memory_space<smem>>
    %273 = vector.broadcast %272 : f32 to vector<1x128xf32>
    %274 = arith.mulf %273, %7 : vector<1x128xf32>
    %275 = arith.addf %271, %274 : vector<1x128xf32>
    %276 = math.tanh %275 : vector<1x128xf32>
    %c11_35 = arith.constant 11 : index
    %277 = memref.load %arg4[%c11_35] : memref<15xf32, #tpu.memory_space<smem>>
    %278 = vector.broadcast %277 : f32 to vector<1x128xf32>
    %279 = arith.mulf %278, %276 : vector<1x128xf32>
    %280 = arith.addf %257, %279 : vector<1x128xf32>
    %281 = arith.addf %235, %280 : vector<1x128xf32>
    %c12_36 = arith.constant 12 : index
    %282 = memref.load %arg3[%c12_36] : memref<15xf32, #tpu.memory_space<smem>>
    %c48 = arith.constant 48 : index
    %283 = memref.load %arg2[%c48] : memref<60xf32, #tpu.memory_space<smem>>
    %284 = vector.broadcast %283 : f32 to vector<1x128xf32>
    %285 = arith.mulf %284, %1 : vector<1x128xf32>
    %286 = vector.broadcast %282 : f32 to vector<1x128xf32>
    %287 = arith.addf %286, %285 : vector<1x128xf32>
    %c49 = arith.constant 49 : index
    %288 = memref.load %arg2[%c49] : memref<60xf32, #tpu.memory_space<smem>>
    %289 = vector.broadcast %288 : f32 to vector<1x128xf32>
    %290 = arith.mulf %289, %3 : vector<1x128xf32>
    %291 = arith.addf %287, %290 : vector<1x128xf32>
    %c50 = arith.constant 50 : index
    %292 = memref.load %arg2[%c50] : memref<60xf32, #tpu.memory_space<smem>>
    %293 = vector.broadcast %292 : f32 to vector<1x128xf32>
    %294 = arith.mulf %293, %5 : vector<1x128xf32>
    %295 = arith.addf %291, %294 : vector<1x128xf32>
    %c51 = arith.constant 51 : index
    %296 = memref.load %arg2[%c51] : memref<60xf32, #tpu.memory_space<smem>>
    %297 = vector.broadcast %296 : f32 to vector<1x128xf32>
    %298 = arith.mulf %297, %7 : vector<1x128xf32>
    %299 = arith.addf %295, %298 : vector<1x128xf32>
    %300 = math.tanh %299 : vector<1x128xf32>
    %c12_37 = arith.constant 12 : index
    %301 = memref.load %arg4[%c12_37] : memref<15xf32, #tpu.memory_space<smem>>
    %302 = vector.broadcast %301 : f32 to vector<1x128xf32>
    %303 = arith.mulf %302, %300 : vector<1x128xf32>
    %c13_38 = arith.constant 13 : index
    %304 = memref.load %arg3[%c13_38] : memref<15xf32, #tpu.memory_space<smem>>
    %c52 = arith.constant 52 : index
    %305 = memref.load %arg2[%c52] : memref<60xf32, #tpu.memory_space<smem>>
    %306 = vector.broadcast %305 : f32 to vector<1x128xf32>
    %307 = arith.mulf %306, %1 : vector<1x128xf32>
    %308 = vector.broadcast %304 : f32 to vector<1x128xf32>
    %309 = arith.addf %308, %307 : vector<1x128xf32>
    %c53 = arith.constant 53 : index
    %310 = memref.load %arg2[%c53] : memref<60xf32, #tpu.memory_space<smem>>
    %311 = vector.broadcast %310 : f32 to vector<1x128xf32>
    %312 = arith.mulf %311, %3 : vector<1x128xf32>
    %313 = arith.addf %309, %312 : vector<1x128xf32>
    %c54 = arith.constant 54 : index
    %314 = memref.load %arg2[%c54] : memref<60xf32, #tpu.memory_space<smem>>
    %315 = vector.broadcast %314 : f32 to vector<1x128xf32>
    %316 = arith.mulf %315, %5 : vector<1x128xf32>
    %317 = arith.addf %313, %316 : vector<1x128xf32>
    %c55 = arith.constant 55 : index
    %318 = memref.load %arg2[%c55] : memref<60xf32, #tpu.memory_space<smem>>
    %319 = vector.broadcast %318 : f32 to vector<1x128xf32>
    %320 = arith.mulf %319, %7 : vector<1x128xf32>
    %321 = arith.addf %317, %320 : vector<1x128xf32>
    %322 = math.tanh %321 : vector<1x128xf32>
    %c13_39 = arith.constant 13 : index
    %323 = memref.load %arg4[%c13_39] : memref<15xf32, #tpu.memory_space<smem>>
    %324 = vector.broadcast %323 : f32 to vector<1x128xf32>
    %325 = arith.mulf %324, %322 : vector<1x128xf32>
    %326 = arith.addf %303, %325 : vector<1x128xf32>
    %c14_40 = arith.constant 14 : index
    %327 = memref.load %arg3[%c14_40] : memref<15xf32, #tpu.memory_space<smem>>
    %c56 = arith.constant 56 : index
    %328 = memref.load %arg2[%c56] : memref<60xf32, #tpu.memory_space<smem>>
    %329 = vector.broadcast %328 : f32 to vector<1x128xf32>
    %330 = arith.mulf %329, %1 : vector<1x128xf32>
    %331 = vector.broadcast %327 : f32 to vector<1x128xf32>
    %332 = arith.addf %331, %330 : vector<1x128xf32>
    %c57 = arith.constant 57 : index
    %333 = memref.load %arg2[%c57] : memref<60xf32, #tpu.memory_space<smem>>
    %334 = vector.broadcast %333 : f32 to vector<1x128xf32>
    %335 = arith.mulf %334, %3 : vector<1x128xf32>
    %336 = arith.addf %332, %335 : vector<1x128xf32>
    %c58 = arith.constant 58 : index
    %337 = memref.load %arg2[%c58] : memref<60xf32, #tpu.memory_space<smem>>
    %338 = vector.broadcast %337 : f32 to vector<1x128xf32>
    %339 = arith.mulf %338, %5 : vector<1x128xf32>
    %340 = arith.addf %336, %339 : vector<1x128xf32>
    %c59 = arith.constant 59 : index
    %341 = memref.load %arg2[%c59] : memref<60xf32, #tpu.memory_space<smem>>
    %342 = vector.broadcast %341 : f32 to vector<1x128xf32>
    %343 = arith.mulf %342, %7 : vector<1x128xf32>
    %344 = arith.addf %340, %343 : vector<1x128xf32>
    %345 = math.tanh %344 : vector<1x128xf32>
    %c14_41 = arith.constant 14 : index
    %346 = memref.load %arg4[%c14_41] : memref<15xf32, #tpu.memory_space<smem>>
    %347 = vector.broadcast %346 : f32 to vector<1x128xf32>
    %348 = arith.mulf %347, %345 : vector<1x128xf32>
    %349 = arith.addf %348, %326 : vector<1x128xf32>
    %350 = arith.addf %349, %281 : vector<1x128xf32>
    %351 = arith.addf %350, %190 : vector<1x128xf32>
    %c0_42 = arith.constant 0 : index
    %352 = memref.load %arg5[%c0_42] : memref<1xf32, #tpu.memory_space<smem>>
    %353 = vector.broadcast %352 : f32 to vector<1x128xf32>
    %354 = arith.addf %351, %353 : vector<1x128xf32>
    %c0_43 = arith.constant 0 : index
    %c0_44 = arith.constant 0 : index
    %355 = vector.load %arg6[%c0_43, %c0_44] : memref<1x128xf32, #tpu.memory_space<vmem>>, vector<1x128xf32>
    tpu.vector_store %arg6[%c0_43, %c0_44], %354 {strides = array<i32>} : memref<1x128xf32, #tpu.memory_space<vmem>>, vector<1x128xf32>,
    return
  }
  func.func @transform_0(%arg0: i32) -> (i32, i32, i32) {
    %c0_i32 = arith.constant 0 : i32
    %c0_i32_0 = arith.constant 0 : i32
    %c0_i32_1 = arith.constant 0 : i32
    return %c0_i32, %arg0, %c0_i32_0 : i32, i32, i32
  }
  func.func @transform_1(%arg0: i32) -> i32 {
    %c0_i32 = arith.constant 0 : i32
    %c0_i32_0 = arith.constant 0 : i32
    return %c0_i32 : i32
  }
  func.func @transform_2(%arg0: i32) -> i32 {
    %c0_i32 = arith.constant 0 : i32
    %c0_i32_0 = arith.constant 0 : i32
    return %c0_i32 : i32
  }
  func.func @transform_3(%arg0: i32) -> i32 {
    %c0_i32 = arith.constant 0 : i32
    %c0_i32_0 = arith.constant 0 : i32
    return %c0_i32 : i32
  }
  func.func @transform_4(%arg0: i32) -> i32 {
    %c0_i32 = arith.constant 0 : i32
    %c0_i32_0 = arith.constant 0 : i32
    return %c0_i32 : i32
  }
  func.func @transform_5(%arg0: i32) -> (i32, i32) {
    %c0_i32 = arith.constant 0 : i32
    %c0_i32_0 = arith.constant 0 : i32
    return %arg0, %c0_i32 : i32, i32
  }
}

</mosaic_0001>

<bundles_post_ra>
// kernel: tpu_custom_call.1
= control target key start
LH: loop header
LB: loop body
LE: loop exit
PB: predicated region body
PF: predicated region fallthrough
CT: control target
= control target key end

     0   :  { %s1072_s0 = inlined_call_operand.hbm [shape: f32[4,1,128], index: 0, kind: input, shape index: {}]   ;;  %s1073_s1 = inlined_call_operand.vmem [shape: f32[60], index: 1, kind: input, shape index: {}]   ;;  %s1074_s2 = inlined_call_operand.vmem [shape: f32[15], index: 2, kind: input, shape index: {}]   ;;  %s1075_s3 = inlined_call_operand.vmem [shape: f32[15], index: 3, kind: input, shape index: {}]   ;;  %s1076_s4 = inlined_call_operand.<no memory space> [shape: f32[1], index: 4, kind: input, shape index: {}]   ;;  %s1077_s5 = inlined_call_operand.hbm [shape: f32[1,128], index: 5, kind: output, shape index: {}]  }
   0x1   :  { %1078 = sst [smem:[#allocation23_spill]] %s1076_s4 }
   0x2   :  { %1079 = sst [smem:[#allocation24_spill]] %s1077_s5 }
   0x3   :  { %11 = vsyncpa [#allocation4], 0 }
   0x4   :  { %12 = vsyncpa [#allocation6], 0 }
   0x5   :  { %13 = vsyncpa [#allocation9], 0  ;;  %s42_s20 = sshll.u32 %s1074_s2, 4  ;;  %s43_s20 = int_to_ptr.vmem [resolvable:$true] %s42_s20 }
   0x6   :  { %14 = vsyncpa [#allocation5], 0  ;;  %s19_s23 = sshll.u32 %s1072_s0, 4  ;;  %s664_s24 = smov [#allocation8]   ;;  %s20_s23 = int_to_ptr.hbm [resolvable:$true] %s19_s23 }
   0x7   :  { %45 = dma.vmem_to_smem %s43_s20, 16, %s664_s24, [#allocation9]  }
   0x8   :  { %s665_s25 = smov [#allocation3]   ;;  %s666_s27 = smov 16  }
   0x9   :  { %s21_s26 = sshll.u32 %s665_s25, 4  ;;  %s667_s28 = smov 1   ;;  %s22_s26 = int_to_ptr.vmem [resolvable:$true] %s21_s26 }
   0xa   :  { %27 = dma.hbm_to_vmem [thread:$0]  %s20_s23, 64, %s22_s26, [#allocation4], %s666_s27, %s666_s27, %s667_s28  }
   0xb   :  { %s33_s6 = sshll.u32 %s1073_s1, 4  ;;  %s51_s8 = sshll.u32 %s1075_s3, 4  ;;  %s34_s6 = int_to_ptr.vmem [resolvable:$true] %s33_s6  ;;  %s52_s8 = int_to_ptr.vmem [resolvable:$true] %s51_s8 }
   0xc   :  { %s668_s9 = smov [#allocation7]   ;;  %s669_s0 = smov [#allocation10]  }
   0xd   :  { %36 = dma.vmem_to_smem %s34_s6, 16, %s668_s9, [#allocation6]  }
   0xe   :  { %54 = dma.vmem_to_smem %s52_s8, 16, %s669_s0, [#allocation9]  }
   0xf   :  { %656 = dma.done.wait [#allocation4], 64  }
  0x10   :  { %657 = vsyncadd [#allocation4], 4294967232 }
  0x11   :  { %658 = dma.done.wait [#allocation6], 16  }
  0x12   :  { %659 = vsyncadd [#allocation6], 4294967280 }
  0x13   :  { %660 = dma.done.wait [#allocation9], 32  }
  0x14   :  { %661 = vsyncadd [#allocation9], 4294967264 }
  0x15   :  { %73 = sfence }
  0x16   :  { %s713_s10 = sld [smem:[#allocation8]]  ;;  %v781_v0 = vld [vmem:[#allocation3] sm:$0x1]  ;;  %v795_v5 = vld [vmem:[#allocation3 + $0x1] sm:$0x1] }
  0x17   :  { %s715_s1 = sld [smem:[#allocation7]]  ;;  %v802_v9 = vld [vmem:[#allocation3 + $0x2] sm:$0x1]  ;;  %v839_v35 = vld [vmem:[#allocation3 + $0x3] sm:$0x1] }
  0x18   :  { %s717_s11 = sld [smem:[#allocation7 + $0x1]] }
  0x19   :  { %s719_s12 = sld [smem:[#allocation7 + $0x2]] }
  0x1a   :  { %s721_s3 = sld [smem:[#allocation7 + $0x3]] }
  0x1b   :  { %s723_s13 = sld [smem:[#allocation10]] }
  0x1c   :  { %s725_s14 = sld [smem:[#allocation8 + $0x1]]  ;;  %v85_v6 = vstv %s713_s10 }
  0x1d   :  { %s727_s15 = sld [smem:[#allocation7 + $0x4]]  ;;  %v83_v1 = vstv %s715_s1 }
  0x1e   :  { %s729_s16 = sld [smem:[#allocation7 + $0x5]]  ;;  %v84_v3 = vmul.f32 %v83_v1, %v781_v0  ;;  %v88_v7 = vstv %s717_s11 }
  0x1f   :  { %s731_s17 = sld [smem:[#allocation7 + $0x6]]  ;;  %v92_v10 = vstv %s719_s12  ;;  %v89_v17 = vmul.f32 %v88_v7, %v795_v5 }
  0x20   :  { %s733_s18 = sld [smem:[#allocation7 + $0x7]]  ;;  %v86_v16 = vadd.f32 %v85_v6, %v84_v3  ;;  %v93_v20 = vmul.f32 %v92_v10, %v802_v9  ;;  %v96_v32 = vstv %s721_s3 }
  0x21   :  { %1080 = sst [smem:[#allocation16_spill]] %s723_s13  ;;  %v97_v49 = vmul.f32 %v96_v32, %v839_v35 }
  0x22   :  { %s735_s19 = sld [smem:[#allocation10 + $0x1]]  ;;  %v107_v11 = vstv %s725_s14  ;;  %v90_v31 = vadd.f32 %v89_v17, %v86_v16 }
  0x23   :  { %s737_s20 = sld [smem:[#allocation8 + $0x2]]  ;;  %v105_v2 = vstv %s727_s15 }
  0x24   :  { %s739_s21 = sld [smem:[#allocation7 + $0x8]]  ;;  %v106_v8 = vmul.f32 %v105_v2, %v781_v0  ;;  %v110_v12 = vstv %s729_s16  ;;  %v94_v48 = vadd.f32 %v93_v20, %v90_v31 }
  0x25   :  { %s741_s22 = sld [smem:[#allocation7 + $0x9]]  ;;  %v111_v22 = vmul.f32 %v110_v12, %v795_v5  ;;  %v114_v23 = vstv %s731_s17 }
  0x26   :  { %s743_s23 = sld [smem:[#allocation7 + $0xa]]  ;;  %v108_v21 = vadd.f32 %v107_v11, %v106_v8  ;;  %v115_v37 = vmul.f32 %v114_v23, %v802_v9  ;;  %v118_v38 = vstv %s733_s18 }
  0x27   :  { %s745_s24 = sld [smem:[#allocation7 + $0xb]]  ;;  %v119_v53 = vmul.f32 %v118_v38, %v839_v35 }
  0x28   :  { %1081 = sst [smem:[#allocation17_spill]] %s735_s19  ;;  %v112_v36 = vadd.f32 %v111_v22, %v108_v21 }
  0x29   :  { %s747_s25 = sld [smem:[#allocation10 + $0x2]]  ;;  %v130_v18 = vstv %s737_s20 }
  0x2a   :  { %s749_s26 = sld [smem:[#allocation8 + $0x3]]  ;;  %v128_v4 = vstv %s739_s21  ;;  %v116_v52 = vadd.f32 %v115_v37, %v112_v36 }
  0x2b   :  { %s751_s27 = sld [smem:[#allocation7 + $0xc]]  ;;  %v129_v13 = vmul.f32 %v128_v4, %v781_v0  ;;  %v133_v14 = vstv %s741_s22  ;;  %v98_v4 = vadd.f32 %v97_v49, %v94_v48 }
  0x2c   :  { %s753_s28 = sld [smem:[#allocation7 + $0xd]]  ;;  %v134_v24 = vmul.f32 %v133_v14, %v795_v5  ;;  %v137_v25 = vstv %s743_s23  ;;  %v120_v6 = vadd.f32 %v119_v53, %v116_v52 }
  0x2d   :  { %s755_s29 = sld [smem:[#allocation7 + $0xe]]  ;;  %v131_v27 = vadd.f32 %v130_v18, %v129_v13  ;;  %v138_v40 = vmul.f32 %v137_v25, %v802_v9  ;;  %v141_v41 = vstv %s745_s24  ;;  %542 = vtanh.f32 %v98_v4 }
  0x2e   :  { %s757_s30 = sld [smem:[#allocation7 + $0xf]]  ;;  %v142_v56 = vmul.f32 %v141_v41, %v839_v35  ;;  %544 = vtanh.f32 %v120_v6 }
  0x2f   :  { %1082 = sst [smem:[#allocation18_spill]] %s747_s25  ;;  %v135_v44 = vadd.f32 %v134_v24, %v131_v27 }
  0x30   :  { %s759_s6 = sld [smem:[#allocation10 + $0x3]]  ;;  %v152_v28 = vstv %s749_s26 }
  0x31   :  { %s761_s2 = sld [smem:[#allocation8 + $0x4]]  ;;  %v150_v15 = vstv %s751_s27  ;;  %v139_v60 = vadd.f32 %v138_v40, %v135_v44 }
  0x32   :  { %s763_s7 = sld [smem:[#allocation7 + $0x10]]  ;;  %v151_v26 = vmul.f32 %v150_v15, %v781_v0  ;;  %v155_v29 = vstv %s753_s28 }
  0x33   :  { %s765_s8 = sld [smem:[#allocation7 + $0x11]]  ;;  %v156_v43 = vmul.f32 %v155_v29, %v795_v5  ;;  %v159_v45 = vstv %s755_s29  ;;  %v143_v14 = vadd.f32 %v142_v56, %v139_v60  ;;  %v921_v41 = vpop.eup %542 }
  0x34   :  { %1083 = sst [smem:[#allocation19_spill]] %s757_s30  ;;  %v153_v42 = vadd.f32 %v152_v28, %v151_v26  ;;  %v160_v58 = vmul.f32 %v159_v45, %v802_v9  ;;  %v927_v45 = vpop.eup %544 }
  0x35   :  { %s767_s9 = sld [smem:[#allocation7 + $0x12]]  ;;  %546 = vtanh.f32 %v143_v14 }
  0x36   :  { %1084 = sst [smem:[#allocation20_spill]] %s759_s6  ;;  %v157_v57 = vadd.f32 %v156_v43, %v153_v42 }
  0x37   :  { %s769_s0 = sld [smem:[#allocation7 + $0x13]]  ;;  %v176_v33 = vstv %s761_s2 }
  0x38   :  { %s771_s5 = sld [smem:[#allocation10 + $0x4]]  ;;  %v174_v19 = vstv %s763_s7  ;;  %v161_v10 = vadd.f32 %v160_v58, %v157_v57 }
  0x39   :  { %s773_s4 = sld [smem:[#allocation8 + $0x5]]  ;;  %v175_v30 = vmul.f32 %v174_v19, %v781_v0  ;;  %v179_v34 = vstv %s765_s8 }
  0x3a   :  { %s775_s25 = sld [smem:[#allocation7 + $0x14]]  ;;  %v180_v47 = vmul.f32 %v179_v34, %v795_v5 }
  0x3b   :  { %s777_s6 = sld [smem:[#allocation7 + $0x15]]  ;;  %v177_v46 = vadd.f32 %v176_v33, %v175_v30  ;;  %v183_v50 = vstv %s767_s9 }
  0x3c   :  { %s779_s19 = sld [smem:[#allocation7 + $0x16]]  ;;  %v184_v63 = vmul.f32 %v183_v50, %v802_v9  ;;  %v935_v50 = vpop.eup %546 }
  0x3d   :  { %1085 = sst [smem:[#allocation21_spill]] %s769_s0  ;;  %v181_v62 = vadd.f32 %v180_v47, %v177_v46 }
  0x3e   :  { %1086 = sst [smem:[#allocation22_spill]] %s771_s5 }
  0x3f   :  { %s784_s13 = sld [smem:[#allocation7 + $0x17]]  ;;  %v198_v54 = vstv %s773_s4  ;;  %v185_v15 = vadd.f32 %v184_v63, %v181_v62 }
  0x40   :  { %s787_s0 = sld [smem:[#allocation10 + $0x5]]  ;;  %v196_v39 = vstv %s775_s25 }
  0x41   :  { %s789_s5 = sld [smem:[#allocation8 + $0x6]]  ;;  %v197_v51 = vmul.f32 %v196_v39, %v781_v0  ;;  %v201_v55 = vstv %s777_s6 }
  0x42   :  { %s793_s30 = sld [smem:[#allocation7 + $0x18]]  ;;  %v202_v3 = vmul.f32 %v201_v55, %v795_v5  ;;  %v205_v7 = vstv %s779_s19 }
  0x43   :  { %s800_s1 = sld [smem:[#allocation7 + $0x19]]  ;;  %v199_v2 = vadd.f32 %v198_v54, %v197_v51  ;;  %v206_v18 = vmul.f32 %v205_v7, %v802_v9 }
  0x44   :  { %s807_s15 = sld [smem:[#allocation7 + $0x1a]] }
  0x45   :  { %s812_s10 = sld [smem:[#allocation7 + $0x1b]]  ;;  %v203_v17 = vadd.f32 %v202_v3, %v199_v2  ;;  %v209_v19 = vstv %s784_s13 }
  0x46   :  { %s817_s11 = sld [smem:[#allocation10 + $0x6]]  ;;  %v210_v27 = vmul.f32 %v209_v19, %v839_v35 }
  0x47   :  { %s821_s12 = sld [smem:[#allocation8 + $0x7]]  ;;  %v221_v12 = vstv %s789_s5  ;;  %v207_v29 = vadd.f32 %v206_v18, %v203_v17 }
  0x48   :  { %s827_s14 = sld [smem:[#allocation7 + $0x1c]]  ;;  %v219_v59 = vstv %s793_s30 }
  0x49   :  { %s832_s16 = sld [smem:[#allocation7 + $0x1d]]  ;;  %v220_v8 = vmul.f32 %v219_v59, %v781_v0  ;;  %v224_v13 = vstv %s800_s1  ;;  %v929_v46 = vadd.f32 %v210_v27, %v207_v29 }
  0x4a   :  { %s837_s17 = sld [smem:[#allocation7 + $0x1e]]  ;;  %v225_v22 = vmul.f32 %v224_v13, %v795_v5  ;;  %v228_v25 = vstv %s807_s15 }
  0x4b   :  { %s844_s20 = sld [smem:[#allocation7 + $0x1f]]  ;;  %v222_v21 = vadd.f32 %v221_v12, %v220_v8  ;;  %v229_v34 = vmul.f32 %v228_v25, %v802_v9  ;;  %v232_v38 = vstv %s812_s10 }
  0x4c   :  { %s849_s3 = sld [smem:[#allocation10 + $0x7]]  ;;  %v233_v52 = vmul.f32 %v232_v38, %v839_v35 }
  0x4d   :  { %s853_s18 = sld [smem:[#allocation8 + $0x8]]  ;;  %v243_v30 = vstv %s821_s12  ;;  %v226_v33 = vadd.f32 %v225_v22, %v222_v21 }
  0x4e   :  { %s1087_s21 = sld [smem:[#allocation19_spill]]  ;;  %v241_v20 = vstv %s827_s14 }
  0x4f   :  { %s858_s22 = sld [smem:[#allocation7 + $0x20]]  ;;  %v242_v28 = vmul.f32 %v241_v20, %v781_v0  ;;  %v246_v31 = vstv %s832_s16  ;;  %v230_v51 = vadd.f32 %v229_v34, %v226_v33 }
  0x50   :  { %s1088_s23 = sld [smem:[#allocation21_spill]]  ;;  %v250_v39 = vstv %s837_s17  ;;  %v247_v43 = vmul.f32 %v246_v31, %v795_v5 }
  0x51   :  { %s863_s24 = sld [smem:[#allocation7 + $0x21]]  ;;  %v244_v42 = vadd.f32 %v243_v30, %v242_v28  ;;  %v251_v53 = vmul.f32 %v250_v39, %v802_v9  ;;  %v254_v55 = vstv %s844_s20 }
  0x52   :  { %s868_s25 = sld [smem:[#allocation7 + $0x22]]  ;;  %v255_v17 = vmul.f32 %v254_v55, %v839_v35 }
  0x53   :  { %s872_s4 = sld [smem:[#allocation7 + $0x23]]  ;;  %v268_v36 = vstv %s853_s18  ;;  %v248_v59 = vadd.f32 %v247_v43, %v244_v42 }
  0x54   :  { %v163_v61 = vstv %s1087_s21  ;;  %s876_s26 = sld [smem:[#allocation8 + $0x9]] }
  0x55   :  { %s880_s27 = sld [smem:[#allocation7 + $0x24]]  ;;  %v164_v11 = vmul.f32 %v163_v61, %v839_v35  ;;  %v266_v23 = vstv %s858_s22  ;;  %v252_v20 = vadd.f32 %v251_v53, %v248_v59 }
  0x56   :  { %v187_v1 = vstv %s1088_s23  ;;  %s885_s28 = sld [smem:[#allocation7 + $0x25]]  ;;  %v267_v32 = vmul.f32 %v266_v23, %v781_v0 }
  0x57   :  { %v188_v16 = vmul.f32 %v187_v1, %v839_v35  ;;  %s888_s29 = sld [smem:[#allocation7 + $0x26]]  ;;  %v165_v24 = vadd.f32 %v164_v11, %v161_v10  ;;  %v271_v37 = vstv %s863_s24 }
  0x58   :  { %s893_s19 = sld [smem:[#allocation7 + $0x28]]  ;;  %v269_v47 = vadd.f32 %v268_v36, %v267_v32  ;;  %v272_v48 = vmul.f32 %v271_v37, %v795_v5  ;;  %v275_v49 = vstv %s868_s25 }
  0x59   :  { %s897_s5 = sld [smem:[#allocation7 + $0x27]]  ;;  %v189_v26 = vadd.f32 %v188_v16, %v185_v15  ;;  %548 = vtanh.f32 %v165_v24  ;;  %v276_v60 = vmul.f32 %v275_v49, %v802_v9  ;;  %v279_v2 = vstv %s872_s4 }
  0x5a   :  { %s900_s30 = sld [smem:[#allocation8 + $0xa]]  ;;  %v290_v56 = vstv %s876_s26  ;;  %v273_v1 = vadd.f32 %v272_v48, %v269_v47  ;;  %v234_v16 = vadd.f32 %v233_v52, %v230_v51  ;;  %v280_v22 = vmul.f32 %v279_v2, %v839_v35 }
  0x5b   :  { %s904_s13 = sld [smem:[#allocation7 + $0x29]]  ;;  %v288_v40 = vstv %s880_s27  ;;  %550 = vtanh.f32 %v189_v26  ;;  %v256_v48 = vadd.f32 %v255_v17, %v252_v20 }
  0x5c   :  { %s909_s6 = sld [smem:[#allocation7 + $0x2a]]  ;;  %v289_v54 = vmul.f32 %v288_v40, %v781_v0  ;;  %v293_v57 = vstv %s885_s28  ;;  %v277_v21 = vadd.f32 %v276_v60, %v273_v1  ;;  %552 = vtanh.f32 %v929_v46 }
  0x5d   :  { %s914_s2 = sld [smem:[#allocation8 + $0xb]]  ;;  %v294_v8 = vmul.f32 %v293_v57, %v795_v5  ;;  %v297_v12 = vstv %s888_s29  ;;  %554 = vtanh.f32 %v234_v16 }
  0x5e   :  { %s919_s7 = sld [smem:[#allocation7 + $0x2c]]  ;;  %v311_v44 = vstv %s893_s19  ;;  %v291_v7 = vadd.f32 %v290_v56, %v289_v54  ;;  %v298_v25 = vmul.f32 %v297_v12, %v802_v9  ;;  %v281_v55 = vadd.f32 %v280_v22, %v277_v21 }
  0x5f   :  { %s925_s8 = sld [smem:[#allocation7 + $0x2d]]  ;;  %v312_v58 = vmul.f32 %v311_v44, %v781_v0  ;;  %v953_v63 = vpop.eup %548  ;;  %v301_v26 = vstv %s897_s5  ;;  %556 = vtanh.f32 %v256_v48 }
  0x60   :  { %s933_s9 = sld [smem:[#allocation7 + $0x2e]]  ;;  %v313_v61 = vstv %s900_s30  ;;  %v295_v24 = vadd.f32 %v294_v8, %v291_v7  ;;  %v302_v37 = vmul.f32 %v301_v26, %v839_v35  ;;  %558 = vtanh.f32 %v281_v55 }
  0x61   :  { %s940_s1 = sld [smem:[#allocation7 + $0x2b]]  ;;  %v316_v62 = vstv %s904_s13  ;;  %v960_v6 = vpop.eup %550  ;;  %v314_v13 = vadd.f32 %v313_v61, %v312_v58 }
  0x62   :  { %s946_s15 = sld [smem:[#allocation7 + $0x2f]]  ;;  %v317_v14 = vmul.f32 %v316_v62, %v795_v5  ;;  %v320_v15 = vstv %s909_s6  ;;  %v299_v42 = vadd.f32 %v298_v25, %v295_v24 }
  0x63   :  { %s951_s10 = sld [smem:[#allocation8 + $0xc]]  ;;  %v335_v4 = vstv %s914_s2  ;;  %v321_v27 = vmul.f32 %v320_v15, %v802_v9 }
  0x64   :  { %v333_v3 = vstv %s919_s7  ;;  %s958_s12 = sld [smem:[#allocation7 + $0x30]]  ;;  %v318_v28 = vadd.f32 %v317_v14, %v314_v13  ;;  %v303_v58 = vadd.f32 %v302_v37, %v299_v42  ;;  %v259_v37 = vstv %s849_s3 }
  0x65   :  { %v334_v10 = vmul.f32 %v333_v3, %v781_v0  ;;  %v338_v11 = vstv %s925_s8  ;;  %s965_s14 = sld [smem:[#allocation7 + $0x31]] }
  0x66   :  { %s970_s16 = sld [smem:[#allocation7 + $0x32]]  ;;  %v339_v19 = vmul.f32 %v338_v11, %v795_v5  ;;  %v342_v23 = vstv %s933_s9  ;;  %v322_v49 = vadd.f32 %v321_v27, %v318_v28  ;;  %560 = vtanh.f32 %v303_v58 }
  0x67   :  { %v336_v18 = vadd.f32 %v335_v4, %v334_v10  ;;  %s974_s17 = sld [smem:[#allocation7 + $0x33]]  ;;  %v324_v29 = vstv %s940_s1  ;;  %v343_v33 = vmul.f32 %v342_v23, %v802_v9  ;;  %v553_v10 = vpop.eup %552 }
  0x68   :  { %s977_s20 = sld [smem:[#allocation10 + $0x8]]  ;;  %v346_v38 = vstv %s946_s15  ;;  %v325_v51 = vmul.f32 %v324_v29, %v839_v35  ;;  %v555_v13 = vpop.eup %554  ;;  %s670_s15 = smov [#allocation11]  }
  0x69   :  { %s983_s18 = sld [smem:[#allocation8 + $0xd]]  ;;  %v359_v31 = vstv %s951_s10  ;;  %v340_v32 = vadd.f32 %v339_v19, %v336_v18  ;;  %v347_v53 = vmul.f32 %v346_v38, %v839_v35  ;;  %v557_v23 = vpop.eup %556  ;;  %s434_s10 = sshll.u32 %s670_s15, 4  ;;  %s435_s10 = int_to_ptr.vmem [resolvable:$true] %s434_s10 }
  0x6a   :  { %v357_v30 = vstv %s958_s12  ;;  %s988_s21 = sld [smem:[#allocation7 + $0x34]]  ;;  %v326_v62 = vadd.f32 %v325_v51, %v322_v49 }
  0x6b   :  { %v358_v34 = vmul.f32 %v357_v30, %v781_v0  ;;  %v362_v36 = vstv %s965_s14  ;;  %s993_s22 = sld [smem:[#allocation7 + $0x35]]  ;;  %v344_v52 = vadd.f32 %v343_v33, %v340_v32  ;;  %v214_v33 = vstv %s787_s0 }
  0x6c   :  { %v363_v39 = vmul.f32 %v362_v36, %v795_v5  ;;  %v366_v40 = vstv %s970_s16  ;;  %s999_s23 = sld [smem:[#allocation7 + $0x36]]  ;;  %562 = vtanh.f32 %v326_v62 }
  0x6d   :  { %v360_v43 = vadd.f32 %v359_v31, %v358_v34  ;;  %v367_v44 = vmul.f32 %v366_v40, %v802_v9  ;;  %v370_v47 = vstv %s974_s17  ;;  %s1003_s24 = sld [smem:[#allocation7 + $0x37]]  ;;  %v348_v3 = vadd.f32 %v347_v53, %v344_v52  ;;  %v559_v31 = vpop.eup %558 }
  0x6e   :  { %s1006_s25 = sld [smem:[#allocation10 + $0x9]]  ;;  %v371_v56 = vmul.f32 %v370_v47, %v839_v35  ;;  %v237_v34 = vstv %s817_s11  ;;  %v561_v36 = vpop.eup %560  ;;  %v284_v42 = vstv %s977_s20 }
  0x6f   :  { %v364_v54 = vadd.f32 %v363_v39, %v360_v43  ;;  %s1010_s4 = sld [smem:[#allocation8 + $0xe]]  ;;  %v381_v46 = vstv %s983_s18  ;;  %564 = vtanh.f32 %v348_v3  ;;  %v238_v53 = vmul.f32 %v555_v13, %v237_v34 }
  0x70   :  { %v379_v57 = vstv %s988_s21  ;;  %s1015_s26 = sld [smem:[#allocation7 + $0x38]] }
  0x71   :  { %s1089_s27 = sld [smem:[#allocation16_spill]]  ;;  %v368_v59 = vadd.f32 %v367_v44, %v364_v54  ;;  %v380_v60 = vmul.f32 %v379_v57, %v781_v0  ;;  %v384_v61 = vstv %s993_s22  ;;  %v260_v54 = vmul.f32 %v557_v23, %v259_v37 }
  0x72   :  { %s1019_s28 = sld [smem:[#allocation7 + $0x39]]  ;;  %v385_v1 = vmul.f32 %v384_v61, %v795_v5  ;;  %v388_v2 = vstv %s999_s23  ;;  %v563_v39 = vpop.eup %562  ;;  %v285_v57 = vmul.f32 %v559_v31, %v284_v42 }
  0x73   :  { %s1090_s29 = sld [smem:[#allocation17_spill]]  ;;  %v382_v4 = vadd.f32 %v381_v46, %v380_v60  ;;  %v389_v7 = vmul.f32 %v388_v2, %v802_v9  ;;  %v392_v8 = vstv %s1003_s24  ;;  %v372_v12 = vadd.f32 %v371_v56, %v368_v59 }
  0x74   :  { %s1023_s19 = sld [smem:[#allocation7 + $0x3a]]  ;;  %v393_v16 = vmul.f32 %v392_v8, %v839_v35  ;;  %v306_v44 = vstv %s1006_s25  ;;  %v261_v62 = vadd.f32 %v260_v54, %v238_v53 }
  0x75   :  { %s1091_s5 = sld [smem:[#allocation18_spill]]  ;;  %v386_v15 = vadd.f32 %v385_v1, %v382_v4  ;;  %v404_v19 = vstv %s1010_s4  ;;  %566 = vtanh.f32 %v372_v12  ;;  %v565_v43 = vpop.eup %564 }
  0x76   :  { %s1027_s30 = sld [smem:[#allocation7 + $0x3b]]  ;;  %v402_v18 = vstv %s1015_s26 }
  0x77   :  { %v101_v11 = vstv %s1089_s27  ;;  %s1030_s13 = sld [smem:[#allocation10 + $0xa]]  ;;  %v390_v20 = vadd.f32 %v389_v7, %v386_v15  ;;  %v403_v21 = vmul.f32 %v402_v18, %v781_v0 }
  0x78   :  { %s1092_s6 = sld [smem:[#allocation20_spill]]  ;;  %v407_v22 = vstv %s1019_s28  ;;  %v102_v32 = vmul.f32 %v921_v41, %v101_v11 }
  0x79   :  { %v123_v14 = vstv %s1090_s29  ;;  %s1033_s2 = sld [smem:[#allocation10 + $0xb]]  ;;  %v408_v25 = vmul.f32 %v407_v22, %v795_v5  ;;  %v394_v27 = vadd.f32 %v393_v16, %v390_v20  ;;  %v405_v28 = vadd.f32 %v404_v19, %v403_v21 }
  0x7a   :  { %s1037_s7 = sld [smem:[#allocation10 + $0xc]]  ;;  %v411_v26 = vstv %s1023_s19 }
  0x7b   :  { %v146_v17 = vstv %s1091_s5  ;;  %s1093_s8 = sld [smem:[#allocation22_spill]]  ;;  %v412_v29 = vmul.f32 %v411_v26, %v802_v9  ;;  %568 = vtanh.f32 %v394_v27  ;;  %v409_v5 = vadd.f32 %v408_v25, %v405_v28  ;;  %v567_v51 = vpop.eup %566 }
  0x7c   :  { %s1041_s9 = sld [smem:[#allocation10 + $0xd]]  ;;  %v415_v30 = vstv %s1027_s30  ;;  %v124_v9 = vmul.f32 %v927_v45, %v123_v14  ;;  %v147_v40 = vmul.f32 %v935_v50, %v146_v17  ;;  %v307_v50 = vmul.f32 %v561_v36, %v306_v44 }
  0x7d   :  { %v416_v38 = vmul.f32 %v415_v30, %v839_v35  ;;  %v329_v47 = vstv %s1030_s13  ;;  %v413_v49 = vadd.f32 %v412_v29, %v409_v5  ;;  %s534_s0 = sld [smem:[#allocation10 + $0xe]]  ;;  %v215_v35 = vmul.f32 %v553_v10, %v214_v33 }
  0x7e   :  { %v168_v24 = vstv %s1092_s6  ;;  %v330_v46 = vmul.f32 %v563_v39, %v329_v47  ;;  %v125_v59 = vadd.f32 %v124_v9, %v102_v32  ;;  %v308_v3 = vadd.f32 %v307_v50, %v285_v57  ;;  %s1094_s1 = sld [smem:[#allocation23_spill]] }
  0x7f   :  { %v169_v41 = vmul.f32 %v953_v63, %v168_v24  ;;  %v351_v48 = vstv %s1033_s2  ;;  %v417_v56 = vadd.f32 %v416_v38, %v413_v49  ;;  %s1095_s16 = sld [smem:[#allocation24_spill]] }
  0x80   :  { %v375_v55 = vstv %s1037_s7  ;;  %v352_v63 = vmul.f32 %v565_v43, %v351_v48 }
  0x81   :  { %v192_v0 = vstv %s1093_s8  ;;  %v569_v58 = vpop.eup %568  ;;  %v170_v60 = vadd.f32 %v169_v41, %v147_v40  ;;  %570 = vtanh.f32 %v417_v56  ;;  %v376_v1 = vmul.f32 %v567_v51, %v375_v55 }
  0x82   :  { %v193_v52 = vmul.f32 %v960_v6, %v192_v0  ;;  %v397_v45 = vstv %s1041_s9  ;;  %v353_v6 = vadd.f32 %v352_v63, %v330_v46 }
  0x83   :  { %v398_v2 = vmul.f32 %v569_v58, %v397_v45  ;;  %v420_v4 = vstv %s534_s0  ;;  %v171_v7 = vadd.f32 %v170_v60, %v125_v59 }
  0x84   :  { %v216_v61 = vadd.f32 %v215_v35, %v193_v52  ;;  %v354_v12 = vadd.f32 %v353_v6, %v308_v3  ;;  %v426_v17 = vstv %s1094_s1 }
  0x85   :  { %v399_v10 = vadd.f32 %v398_v2, %v376_v1  ;;  %s436_s17 = sshll.u32 %s1095_s16, 4  ;;  %s437_s17 = int_to_ptr.hbm [resolvable:$true] %s436_s17 }
  0x86   :  { %v262_v8 = vadd.f32 %v261_v62, %v216_v61 }
  0x87   :  { %v571_v11 = vpop.eup %570 }
  0x88   :  { %v421_v13 = vmul.f32 %v571_v11, %v420_v4  ;;  %v263_v14 = vadd.f32 %v262_v8, %v171_v7 }
  0x8a   :  { %v422_v15 = vadd.f32 %v421_v13, %v399_v10 }
  0x8c   :  { %v423_v16 = vadd.f32 %v422_v15, %v354_v12 }
  0x8e   :  { %v424_v18 = vadd.f32 %v423_v16, %v263_v14 }
  0x90   :  { %v427_v19 = vadd.f32 %v426_v17, %v424_v18 }
  0x92   :  { %428 = vst [vmem:[#allocation11] sm:$0x1] %v427_v19 }
  0x93   :  { %439 = dma.vmem_to_hbm [thread:$0]  %s435_s10, 16, %s437_s17, [#allocation5]  }
  0x94   :  { %662 = dma.done.wait [#allocation5], 16  }
  0x95   :  { %663 = vsyncadd [#allocation5], 4294967280 }
  0x96   :  { %444 = vsyncpa [#allocation4], 1 }
  0x97   :  { %445 = vsyncpa [#allocation5], 1 }
  0x98   :  { %446 = vsyncpa [#allocation6], 1 }
  0x99   :  { %447 = vsyncpa [#allocation9], 1 }

</bundles_post_ra>
